<compile_context>
chip_gen: v7x
topology: tpu7x:2x2x1
jax: 0.10.0
libtpu: 0.0.40
codegen_flags: <defaults>
</compile_context>

<pallas_src>
import functools

import jax
import jax.numpy as jnp
from jax.experimental import pallas as pl
from jax.experimental.pallas import tpu as pltpu


def _vamp_kernel(u_ref, w1_ref, w2_ref, out_ref, *, M):
    # Layer 1: (K, D+1) @ (D+1, H+1) -> f32 accum -> ReLU.
    # Biases are folded in; the extra (H+1)-th column evaluates to 1 after
    # ReLU and plays the role of the ones column for the second layer.
    h = jnp.dot(u_ref[...], w1_ref[...], preferred_element_type=jnp.float32)
    h = jnp.maximum(h, 0.0)

    # Layer 2: (K, H+1) @ (H+1, P) -> f32 accum.  Operands bf16 for the MXU.
    enc = jnp.dot(h.astype(jnp.bfloat16), w2_ref[...],
                  preferred_element_type=jnp.float32)

    # Lane layout of the single (K, P=128) lane-dense output store:
    #   [0, M)    -> Normal mean (identity)
    #   [M, 2M)   -> Normal scale = exp(0.5 * log_var)
    #   [2M, P)   -> zero padding (keeps the store unmasked; sliced off in
    #                the wrapper)
    col = jax.lax.broadcasted_iota(jnp.int32, enc.shape, 1)
    mean_mask = col < M
    log_var_safe = jnp.where(mean_mask, 0.0, enc)  # no exp overflow on mean lanes
    out_ref[...] = jnp.where(mean_mask, enc, jnp.exp(0.5 * log_var_safe))


def vamp_prior_forward(u, w1, b1, w2, b2, weights, M):
    """Returns (vamp_mean, vamp_scale, mixing_probs)."""
    K, D = u.shape
    H = w1.shape[1]
    twoM = w2.shape[1]
    assert twoM == 2 * M
    P = 128  # lane-dense padded encoder-output width

    # --- Fold biases into the matmuls (drops two 256-byte bias DMAs) -------
    # u_aug  = [u | 1]                                   (K, D+1)
    # w1_ext = [[w1, 0], [b1, 1]]                        (D+1, H+1)
    # w2_aug = [[w2 | 0], [b2 | 0]]  zero-padded to P    (H+1, P)
    u_aug = jnp.concatenate([u, jnp.ones((K, 1), u.dtype)], axis=1)

    w1_ext = jnp.zeros((D + 1, H + 1), w1.dtype)
    w1_ext = w1_ext.at[:D, :H].set(w1)
    w1_ext = w1_ext.at[D, :H].set(b1)
    w1_ext = w1_ext.at[D, H].set(1.0)

    w2_aug = jnp.zeros((H + 1, P), w2.dtype)
    w2_aug = w2_aug.at[:H, :twoM].set(w2)
    w2_aug = w2_aug.at[H, :twoM].set(b2)

    # bf16 matmul operands; everything else stays f32.
    u_bf = u_aug.astype(jnp.bfloat16)
    w1_bf = w1_ext.astype(jnp.bfloat16)
    w2_bf = w2_aug.astype(jnp.bfloat16)

    vmem = pl.BlockSpec(memory_space=pltpu.MemorySpace.VMEM)

    cost = pl.CostEstimate(
        flops=2 * K * ((D + 1) * (H + 1) + (H + 1) * P),
        transcendentals=K * P,  # exp evaluated on the full (K, P) tile
        bytes_accessed=2 * (K * (D + 1) + (D + 1) * (H + 1) + (H + 1) * P)
        + 4 * K * P,
    )

    enc_out = pl.pallas_call(
        functools.partial(_vamp_kernel, M=M),
        out_shape=jax.ShapeDtypeStruct((K, P), jnp.float32),
        in_specs=[vmem, vmem, vmem],
        out_specs=vmem,
        cost_estimate=cost,
    )(u_bf, w1_bf, w2_bf)

    # Static chunk in the wrapper (free in XLA); kernel store stays lane-dense.
    vamp_mean = enc_out[:, :M]
    vamp_scale = enc_out[:, M:twoM]

    # Mixing probabilities: K scalars — plain JAX, not worth a kernel DMA.
    probs = jax.nn.softmax(weights + 0.001)

    return vamp_mean, vamp_scale, probs


if __name__ == "__main__":
    # Small, module-consistent shapes:
    #   K = 8 pseudo-inputs, input dim D = 784 (fixed by the module),
    #   latent M = 32, encoder hidden H = 64, encoder output = 2M = 64.
    K, D, H, M = 8, 784, 64, 32

    key = jax.random.PRNGKey(0)
    k_u, k_w1, k_w2 = jax.random.split(key, 3)

    # nn.Parameter(torch.randn(K, 784))
    u = jax.random.normal(k_u, (K, D), dtype=jnp.float32)
    # nn.Parameter(torch.ones(K) / K)
    weights = jnp.ones((K,), dtype=jnp.float32) / K

    # Deterministic synthetic encoder parameters (2-layer MLP).
    w1 = jax.random.normal(k_w1, (D, H), dtype=jnp.float32) * 0.05
    b1 = jnp.zeros((H,), dtype=jnp.float32)
    w2 = jax.random.normal(k_w2, (H, 2 * M), dtype=jnp.float32) * 0.05
    b2 = jnp.zeros((2 * M,), dtype=jnp.float32)

    fwd = jax.jit(vamp_prior_forward, static_argnums=6)
    vamp_mean, vamp_scale, probs = fwd(u, w1, b1, w2, b2, weights, M)
    jax.block_until_ready((vamp_mean, vamp_scale, probs))

    # Pure-JAX f32 reference (encoder + softmax).
    h_ref = jnp.maximum(u @ w1 + b1, 0.0)
    enc_ref = h_ref @ w2 + b2
    mean_ref, logvar_ref = enc_ref[:, :M], enc_ref[:, M:]
    scale_ref = jnp.exp(0.5 * logvar_ref)
    probs_ref = jax.nn.softmax(weights + 0.001)

    # bf16 matmul operands on a 784-length contraction -> relaxed tolerances.
    assert jnp.allclose(vamp_mean, mean_ref, atol=3e-2, rtol=3e-2)
    assert jnp.allclose(vamp_scale, scale_ref, atol=3e-2, rtol=3e-2)
    assert jnp.allclose(probs, probs_ref, atol=1e-6, rtol=1e-6)
    assert vamp_mean.shape == (K, M) and vamp_scale.shape == (K, M)
    assert probs.shape == (K,)

    print("KERNEL_OK")
</pallas_src>

<mosaic_0001>
module attributes {stable_mosaic.version = 11 : i64} {
  func.func @_vamp_kernel(%arg0: memref<8x785xbf16, #tpu.memory_space<vmem>>, %arg1: memref<785x65xbf16, #tpu.memory_space<vmem>>, %arg2: memref<65x128xbf16, #tpu.memory_space<vmem>>, %arg3: memref<8x128xf32, #tpu.memory_space<vmem>>) attributes {dimension_semantics = [], scalar_prefetch = 0 : i64, scratch_operands = 0 : i64, tpu.core_type = #tpu.core_type<tc>} {
    %c0 = arith.constant 0 : index
    %c0_0 = arith.constant 0 : index
    %0 = vector.load %arg0[%c0, %c0_0] : memref<8x785xbf16, #tpu.memory_space<vmem>>, vector<8x785xbf16>
    %c0_1 = arith.constant 0 : index
    %c0_2 = arith.constant 0 : index
    %1 = vector.load %arg1[%c0_1, %c0_2] : memref<785x65xbf16, #tpu.memory_space<vmem>>, vector<785x65xbf16>
    %cst = arith.constant dense<0.000000e+00> : vector<8x65xf32>
    %2 = tpu.matmul %0, %1, %cst {dimension_numbers = #tpu.dot_dimension_numbers<[1], [0], [0], [1], [0, 0, 1, 1], [], []>} : vector<8x785xbf16>, vector<785x65xbf16>, vector<8x65xf32> -> vector<8x65xf32>
    %cst_3 = arith.constant 0.000000e+00 : f32
    %3 = vector.broadcast %cst_3 : f32 to vector<8x65xf32>
    %4 = arith.maximumf %2, %3 : vector<8x65xf32>
    %5 = arith.truncf %4 : vector<8x65xf32> to vector<8x65xbf16>
    %c0_4 = arith.constant 0 : index
    %c0_5 = arith.constant 0 : index
    %6 = vector.load %arg2[%c0_4, %c0_5] : memref<65x128xbf16, #tpu.memory_space<vmem>>, vector<65x128xbf16>
    %cst_6 = arith.constant dense<0.000000e+00> : vector<8x128xf32>
    %7 = tpu.matmul %5, %6, %cst_6 {dimension_numbers = #tpu.dot_dimension_numbers<[1], [0], [0], [1], [0, 0, 1, 1], [], []>} : vector<8x65xbf16>, vector<65x128xbf16>, vector<8x128xf32> -> vector<8x128xf32>
    %8 = tpu.iota {dimensions = array<i32: 1>} : vector<8x128xi32>
    %c32_i32 = arith.constant 32 : i32
    %9 = vector.broadcast %c32_i32 : i32 to vector<8x128xi32>
    %10 = arith.cmpi slt, %8, %9 : vector<8x128xi32>
    %cst_7 = arith.constant 0.000000e+00 : f32
    %11 = vector.broadcast %cst_7 : f32 to vector<8x128xf32>
    %12 = arith.select %10, %11, %7 : vector<8x128xi1>, vector<8x128xf32>
    %cst_8 = arith.constant 5.000000e-01 : f32
    %13 = vector.broadcast %cst_8 : f32 to vector<8x128xf32>
    %14 = arith.mulf %13, %12 : vector<8x128xf32>
    %15 = math.exp %14 : vector<8x128xf32>
    %16 = arith.select %10, %7, %15 : vector<8x128xi1>, vector<8x128xf32>
    %c0_9 = arith.constant 0 : index
    %c0_10 = arith.constant 0 : index
    %17 = vector.load %arg3[%c0_9, %c0_10] : memref<8x128xf32, #tpu.memory_space<vmem>>, vector<8x128xf32>
    tpu.vector_store %arg3[%c0_9, %c0_10], %16 {strides = array<i32>} : memref<8x128xf32, #tpu.memory_space<vmem>>, vector<8x128xf32>,
    return
  }
}

</mosaic_0001>

<bundles_post_ra>
// kernel: vamp_prior_forward.1
= control target key start
LH: loop header
LB: loop body
LE: loop exit
PB: predicated region body
PF: predicated region fallthrough
CT: control target
= control target key end

     0   :  { %v935_v39 = vmov 0.0   ;;  %vm936_vm0 = vmmov 0   ;;  %vm443_vm1 = vcmask 1040384   ;;  %v937_v51 = vmov 0   ;;  %s1149_s1 = inlined_call_operand.vmem [shape: bf16[785,65], index: 1, kind: input, shape index: {}]   ;;  %s1150_s0 = inlined_call_operand.vmem [shape: bf16[8,785], index: 0, kind: input, shape index: {}]   ;;  %s1151_s2 = inlined_call_operand.vmem [shape: bf16[65,128], index: 2, kind: input, shape index: {}]   ;;  %s1152_s3 = inlined_call_operand.vmem [shape: f32[8,128], index: 3, kind: output, shape index: {}]  }
   0x1   :  { %v871_v0 = vld [vmem:[%s1149_s1 + $0x40] sm:$0xff]   ;;  %v875_v4 = vld [vmem:[%s1149_s1 + $0x48] sm:$0xff]   ;;  %v879_v8 = vld [vmem:[%s1149_s1 + $0x50] sm:$0xff]   ;;  %v445_v52 = vsel %vm443_vm1, 65535, %v937_v51  ;;  %vm439_vm2 = vcmask 138240   ;;  %vm647_vm3 = vcmask 531456  }
   0x2   :  { %v872_v1 = vld [vmem:[%s1149_s1 + $0xc0] sm:$0xff]   ;;  %771 = vmatprep.subr.bf16.mxu0 %v871_v0  ;;  %v876_v5 = vld [vmem:[%s1149_s1 + $0xc8] sm:$0xff]   ;;  %v880_v9 = vld [vmem:[%s1149_s1 + $0xd0] sm:$0xff]  }
   0x3   :  { %v873_v2 = vld [vmem:[%s1149_s1] sm:$0xff]   ;;  %793 = vmatprep.subr.bf16.mxu1 %v872_v1  ;;  %v877_v6 = vld [vmem:[%s1149_s1 + $0x8] sm:$0xff]   ;;  %v881_v10 = vld [vmem:[%s1149_s1 + $0x10] sm:$0xff]  }
   0x4   :  { %v874_v3 = vld [vmem:[%s1149_s1 + $0x80] sm:$0xff]   ;;  %772 = vmatpush3.bf16.msra.mxu0 %v873_v2  ;;  %v878_v7 = vld [vmem:[%s1149_s1 + $0x88] sm:$0xff]   ;;  %v882_v11 = vld [vmem:[%s1149_s1 + $0x90] sm:$0xff]  }
   0x5   :  { %794 = vmatpush3.bf16.msra.mxu1 %v874_v3  ;;  %773 = vmatprep.subr.bf16.mxu0 %v875_v4  ;;  %v883_v12 = vld [vmem:[%s1149_s1 + $0x58] sm:$0xff]   ;;  %v887_v16 = vld [vmem:[%s1149_s1 + $0x60] sm:$0xff]   ;;  %v891_v20 = vld [vmem:[%s1149_s1 + $0x68] sm:$0xff]  }
   0x6   :  { %795 = vmatprep.subr.bf16.mxu1 %v876_v5  ;;  %v884_v13 = vld [vmem:[%s1149_s1 + $0xd8] sm:$0xff]   ;;  %v888_v17 = vld [vmem:[%s1149_s1 + $0xe0] sm:$0xff]   ;;  %v892_v21 = vld [vmem:[%s1149_s1 + $0xe8] sm:$0xff]  }
   0x7   :  { %v885_v14 = vld [vmem:[%s1149_s1 + $0x18] sm:$0xff]   ;;  %v889_v18 = vld [vmem:[%s1149_s1 + $0x20] sm:$0xff]   ;;  %v893_v22 = vld [vmem:[%s1149_s1 + $0x28] sm:$0xff]  }
   0x8   :  { %774 = vmatpush3.bf16.msra.mxu0 %v877_v6  ;;  %v886_v15 = vld [vmem:[%s1149_s1 + $0x98] sm:$0xff]   ;;  %v890_v19 = vld [vmem:[%s1149_s1 + $0xa0] sm:$0xff]   ;;  %v894_v23 = vld [vmem:[%s1149_s1 + $0xa8] sm:$0xff]  }
   0x9   :  { %796 = vmatpush3.bf16.msra.mxu1 %v878_v7  ;;  %775 = vmatprep.subr.bf16.mxu0 %v879_v8  ;;  %v895_v24 = vld [vmem:[%s1149_s1 + $0x70] sm:$0xff]   ;;  %v899_v28 = vld [vmem:[%s1149_s1 + $0x78] sm:$0xff]   ;;  %v15_v32 = vld [vmem:[%s1150_s0] sm:$0xff] }
   0xa   :  { %797 = vmatprep.subr.bf16.mxu1 %v880_v9  ;;  %v896_v25 = vld [vmem:[%s1149_s1 + $0xf0] sm:$0xff]   ;;  %v900_v29 = vld [vmem:[%s1149_s1 + $0xf8] sm:$0xff]   ;;  %v707_v33 = vcombine.low %v15_v32, %v15_v32  ;;  %v708_v34 = vcombine.high %v15_v32, %v15_v32  ;;  %v16_v35 = vld [vmem:[%s1150_s0 + $0x8] sm:$0xff] }
   0xb   :  { %v897_v26 = vld [vmem:[%s1149_s1 + $0x30] sm:$0xff]   ;;  %v901_v30 = vld [vmem:[%s1149_s1 + $0x38] sm:$0xff]   ;;  %v709_v36 = vcombine.low %v16_v35, %v16_v35  ;;  %v710_v37 = vcombine.high %v16_v35, %v16_v35  ;;  %v908_v38 = vld [vmem:[%s1149_s1 + $0x140] sm:$0xff]  }
   0xc   :  { %776 = vmatpush3.bf16.msra.mxu0 %v881_v10  ;;  %v898_v27 = vld [vmem:[%s1149_s1 + $0xb0] sm:$0xff]   ;;  %v902_v31 = vld [vmem:[%s1149_s1 + $0xb8] sm:$0xff]   ;;  %481 = vmatprep.mubr.bf16.mxu0 %v708_v34  ;;  %v909_v40 = vld [vmem:[%s1149_s1 + $0x100] sm:$0xff]  }
   0xd   :  { %798 = vmatpush3.bf16.msra.mxu1 %v882_v11  ;;  %777 = vmatprep.subr.bf16.mxu0 %v883_v12  ;;  %v910_v41 = vld [vmem:[%s1149_s1 + $0x148] sm:$0xff]   ;;  %v912_v43 = vld [vmem:[%s1149_s1 + $0x150] sm:$0xff]   ;;  %v914_v45 = vld [vmem:[%s1149_s1 + $0x158] sm:$0xff]  }
   0xe   :  { %799 = vmatprep.subr.bf16.mxu1 %v884_v13  ;;  %521 = vmatprep.mubr.bf16.mxu1 %v710_v37  ;;  %v911_v42 = vld [vmem:[%s1149_s1 + $0x108] sm:$0xff]   ;;  %v913_v44 = vld [vmem:[%s1149_s1 + $0x110] sm:$0xff]   ;;  %v915_v46 = vld [vmem:[%s1149_s1 + $0x118] sm:$0xff]  }
   0xf   :  { %v916_v47 = vld [vmem:[%s1149_s1 + $0x160] sm:$0xff]   ;;  %v17_v50 = vld [vmem:[%s1150_s0 + $0x10] sm:$0xff]  ;;  %v918_v53 = vld [vmem:[%s1149_s1 + $0x168] sm:$0xff]  }
  0x10   :  { %778 = vmatpush3.bf16.msra.mxu0 %v885_v14  ;;  %v922_v48 = vld [vmem:[%s1149_s1 + $0x180] sm:$0xff]   ;;  %v712_v54 = vcombine.high %v17_v50, %v17_v50  ;;  %v927_v55 = vld [vmem:[%s1149_s1 + $0x188] ss:$0 sps:$4 sm:$0x11]   ;;  %v905_v57 = vld [vmem:[%s1150_s0 + $0x18] ss:$0 sps:$4 sm:$0xff]   ;;  %v711_v63 = vcombine.low %v17_v50, %v17_v50 }
  0x11   :  { %800 = vmatpush3.bf16.msra.mxu1 %v886_v15  ;;  %779 = vmatprep.subr.bf16.mxu0 %v887_v16  ;;  %v917_v49 = vld [vmem:[%s1149_s1 + $0x120] sm:$0xff]   ;;  %v447_v56 = vand.u32 %v927_v55, %v445_v52  ;;  %v919_v58 = vld [vmem:[%s1149_s1 + $0x128] sm:$0xff]   ;;  %v920_v59 = vld [vmem:[%s1149_s1 + $0x170] sm:$0xff]  }
  0x12   :  { %801 = vmatprep.subr.bf16.mxu1 %v888_v17  ;;  %v921_v60 = vld [vmem:[%s1149_s1 + $0x130] sm:$0xff]   ;;  %v923_v61 = vld [vmem:[%s1149_s1 + $0x178] sm:$0xff]   ;;  %v928_v0 = vld [vmem:[%s1151_s2] sm:$0xff]  }
  0x13   :  { %v924_v62 = vld [vmem:[%s1149_s1 + $0x138] sm:$0xff]   ;;  %v929_v1 = vld [vmem:[%s1151_s2 + $0x8] sm:$0xff]   ;;  %v930_v2 = vld [vmem:[%s1151_s2 + $0x10] sm:$0xff]  }
  0x14   :  { %780 = vmatpush3.bf16.msra.mxu0 %v889_v18  ;;  %v931_v3 = vld [vmem:[%s1151_s2 + $0x18] sm:$0xff]   ;;  %v932_v4 = vld [vmem:[%s1151_s2 + $0x20] ss:$0 sps:$4 sm:$0x11]  }
  0x15   :  { %802 = vmatpush3.bf16.msra.mxu1 %v890_v19  ;;  %781 = vmatprep.subr.bf16.mxu0 %v891_v20  ;;  %v652_v5 = vand.u32 %v932_v4, %v445_v52 }
  0x16   :  { %803 = vmatprep.subr.bf16.mxu1 %v892_v21 }
  0x18   :  { %782 = vmatpush3.bf16.msra.mxu0 %v893_v22 }
  0x19   :  { %804 = vmatpush3.bf16.msra.mxu1 %v894_v23  ;;  %783 = vmatprep.subr.bf16.mxu0 %v895_v24 }
  0x1a   :  { %805 = vmatprep.subr.bf16.mxu1 %v896_v25 }
  0x1c   :  { %784 = vmatpush3.bf16.msra.mxu0 %v897_v26 }
  0x1d   :  { %806 = vmatpush3.bf16.msra.mxu1 %v898_v27  ;;  %785 = vmatprep.subr.bf16.mxu0 %v899_v28 }
  0x1e   :  { %807 = vmatprep.subr.bf16.mxu1 %v900_v29 }
  0x20   :  { %786 = vmatpush3.bf16.msra.mxu0 %v901_v30  ;;  %v694_v30 = vlaneseq }
  0x21   :  { %808 = vmatpush3.bf16.msra.mxu1 %v902_v31  ;;  %815 = vmatprep.subr.bf16.mxu0 %v908_v38 }
  0x22   :  { %846 = vmatprep.subr.bf16.mxu1 %v935_v39  ;;  %v695_v31 = vand.u32 127, %v694_v30 }
  0x23   :  { %482 = vmatmul.mubr.bf16.vlgmr.msra.gmra.mrb[0].mxu0 %v707_v33 }
  0x24   :  { %522 = vmatmul.mubr.bf16.vlgmr.msra.gmra.mrb[0].mxu1 %v709_v36  ;;  %816 = vmatpush3.bf16.msra.mxu0 %v909_v40  ;;  %vm696_vm4 = vcmp.lt.s32.totalorder %v695_v31, 32 }
  0x25   :  { %850 = vmatprep.mubr.msk.bf16.mxu1 %vm936_vm0, %v935_v39  ;;  %817 = vmatprep.subr.bf16.mxu0 %v910_v41 }
  0x26   :  { %847 = vmatpush3.bf16.msra.mxu1 %v922_v48  ;;  %561 = vmatprep.mubr.bf16.mxu0 %v712_v54 }
  0x27   :  { %848 = vmatprep.subr.bf16.mxu1 %v935_v39 }
  0x28   :  { %818 = vmatpush3.bf16.msra.mxu0 %v911_v42 }
  0x29   :  { %819 = vmatprep.subr.bf16.mxu0 %v912_v43 }
  0x2a   :  { %849 = vmatpush3.bf16.msra.mxu1 %v447_v56 }
  0x2b   :  { %854 = vmatprep.subr.bf16.mxu1 %v935_v39 }
  0x2c   :  { %820 = vmatpush3.bf16.msra.mxu0 %v913_v44 }
  0x2d   :  { %821 = vmatprep.subr.bf16.mxu0 %v914_v45  ;;  %851 = vmatmul.mubr.msk.bf16.vlgmr.msra.gmra.mrb[4].mxu1 %vm439_vm2, %v905_v57 }
  0x2e   :  { %864 = vmatprep.mubr.msk.bf16.mxu1 %vm936_vm0, %v935_v39  ;;  %855 = vmatpush3.bf16.msra.mxu1 %v928_v0 }
  0x2f   :  { %856 = vmatprep.subr.bf16.mxu1 %v935_v39 }
  0x30   :  { %822 = vmatpush3.bf16.msra.mxu0 %v915_v46 }
  0x31   :  { %823 = vmatprep.subr.bf16.mxu0 %v916_v47 }
  0x32   :  { %857 = vmatpush3.bf16.msra.mxu1 %v929_v1 }
  0x33   :  { %858 = vmatprep.subr.bf16.mxu1 %v935_v39 }
  0x34   :  { %824 = vmatpush3.bf16.msra.mxu0 %v917_v49 }
  0x35   :  { %825 = vmatprep.subr.bf16.mxu0 %v918_v53 }
  0x36   :  { %859 = vmatpush3.bf16.msra.mxu1 %v930_v2 }
  0x37   :  { %860 = vmatprep.subr.bf16.mxu1 %v935_v39 }
  0x38   :  { %826 = vmatpush3.bf16.msra.mxu0 %v919_v58 }
  0x39   :  { %827 = vmatprep.subr.bf16.mxu0 %v920_v59 }
  0x3a   :  { %861 = vmatpush3.bf16.msra.mxu1 %v931_v3 }
  0x3b   :  { %862 = vmatprep.subr.bf16.mxu1 %v935_v39 }
  0x3c   :  { %828 = vmatpush3.bf16.msra.mxu0 %v921_v60 }
  0x3d   :  { %829 = vmatprep.subr.bf16.mxu0 %v923_v61 }
  0x3e   :  { %863 = vmatpush3.bf16.msra.mxu1 %v652_v5 }
  0x40   :  { %830 = vmatpush3.bf16.msra.mxu0 %v924_v62 }
  0x43   :  { %562 = vmatmul.mubr.bf16.vlgmr.msra.gmra.mrb[4].mxu0 %v711_v63 }
  0xf6   :  { %v787_v6 = vpop.f32.mrb[0].mxu0 }
  0xf7   :  { %v809_v7 = vpop.f32.mrb[0].mxu1  ;;  %v788_v8 = vpop.f32.mrb[1].mxu0 }
  0xf8   :  { %v789_v9 = vadd.f32 %v788_v8, %v787_v6  ;;  %v810_v10 = vpop.f32.mrb[1].mxu1  ;;  %v790_v11 = vpop.f32.mrb[2].mxu0 }
  0xf9   :  { %v811_v12 = vadd.f32 %v810_v10, %v809_v7  ;;  %v791_v13 = vpop.f32.mrb[3].mxu0  ;;  %v812_v14 = vpop.f32.mrb[2].mxu1 }
  0xfa   :  { %v813_v15 = vpop.f32.mrb[3].mxu1 }
  0xfb   :  { %v524_v16 = vadd.f32 %v811_v12, %v789_v9 }
 0x100   :  { %v603_v17 = vpop.f32.mrb[4].mxu1 }
 0x101   :  { %v852_v18 = vpop.f32.mrb[5].mxu1 }
 0x102   :  { %v606_v19 = vpop.f32.mrb[6].mxu1 }
 0x103   :  { %v853_v20 = vpop.f32.mrb[7].mxu1 }
 0x116   :  { %v831_v21 = vpop.f32.mrb[4].mxu0 }
 0x117   :  { %v832_v22 = vpop.f32.mrb[5].mxu0 }
 0x118   :  { %v833_v23 = vadd.f32 %v832_v22, %v831_v21  ;;  %v834_v24 = vpop.f32.mrb[6].mxu0 }
 0x119   :  { %v835_v25 = vpop.f32.mrb[7].mxu0 }
 0x11a   :  { %v564_v26 = vadd.f32 %v833_v23, %v524_v16 }
 0x11c   :  { %v604_v27 = vadd.f32 %v603_v17, %v564_v26 }
 0x11e   :  { %v609_v28 = vmax.f32 %v604_v27, 0.0 }
 0x120   :  { %v610_v29 = vpack.c.bf16 %v609_v28, %v609_v28 }
 0x122   :  { %865 = vmatmul.mubr.msk.bf16.vlgmr.msra.gmra.mrb[8].mxu1 %vm647_vm3, %v610_v29 }
 0x1f5   :  { %v688_v32 = vpop.f32.mrb[8].mxu1 }
 0x1f6   :  { %v697_v33 = vsel %vm696_vm4, 0.0, %v688_v32  ;;  %v866_v34 = vpop.f32.mrb[9].mxu1 }
 0x1f7   :  { %v698_v35 = vmul.f32 0.5, %v697_v33  ;;  %v691_v36 = vpop.f32.mrb[10].mxu1 }
 0x1f8   :  { %v867_v37 = vpop.f32.mrb[11].mxu1 }
 0x1f9   :  { %v699_v38 = vmul.f32 1.442695, %v698_v35 }
 0x1fb   :  { %933 = vpow2.f32 %v699_v38 }
 0x205   :  { %v934_v39 = vpop.eup %933 }
 0x206   :  { %v701_v40 = vsel %vm696_vm4, %v688_v32, %v934_v39 }
 0x207   :  { %702 = vst [vmem:[%s1152_s3] sm:$0xff] %v701_v40 }

</bundles_post_ra>
